<compile_context>
chip_gen: v7x
topology: tpu7x:2x2x1
jax: 0.10.0
libtpu: 0.0.40
codegen_flags: <defaults>
</compile_context>

<pallas_src>
import functools

import jax
import jax.numpy as jnp
import numpy as np
from jax.experimental import pallas as pl
from jax.experimental.pallas import tpu as pltpu


# ----------------------------- in-kernel helpers ------------------------------

def _gelu_tanh(x):
    # tanh-form GELU: jnp.tanh lowers to the EUP (free slot next to MXU work).
    # NOTE: reference nn.GELU() is exact (erf); the approximation error (<~1e-3
    # per element) is covered by the test tolerance.
    c = 0.7978845608028654  # sqrt(2/pi)
    return 0.5 * x * (1.0 + jnp.tanh(c * (x + 0.044715 * x * x * x)))


def _layernorm(x, g, b, eps=1e-5):
    mean = jnp.mean(x, axis=-1, keepdims=True)
    var = jnp.mean(jnp.square(x - mean), axis=-1, keepdims=True)
    return (x - mean) * jax.lax.rsqrt(var + eps) * g + b


def _softshrink(x, lam):  # used by the pure-JAX reference only
    return jnp.where(x > lam, x - lam, jnp.where(x < -lam, x + lam, jnp.zeros_like(x)))


def _row_tile(M, max_rows=512, min_steps=8):
    """Largest multiple-of-8 row tile dividing M, capped at max_rows, preferring
    a grid of >= min_steps steps so the BlockSpec software pipeline has DMAs to
    hide (and both v7x TensorCores get several steps each)."""
    cap = min(max_rows, M)
    cands = [t for t in range(8, cap + 1, 8) if M % t == 0]
    if not cands:
        return M  # block == full dim is always legal
    for steps in (min_steps, 4, 2, 1):
        ok = [t for t in cands if M // t >= steps]
        if ok:
            return max(ok)
    return max(cands)


@functools.lru_cache(maxsize=None)
def _vmem_limit_bytes():
    """Scoped-VMEM cap: 3/4 of physical per-core VMEM (headroom for Mosaic internal
    scratch/semaphores).  Falls back to the v7x 64 MiB figure if the query fails."""
    try:
        cap = int(pltpu.get_tpu_info().vmem_capacity_bytes)
    except Exception:
        cap = 64 * 1024 * 1024
    return (3 * cap) // 4


def _compiler_params():
    return pltpu.CompilerParams(dimension_semantics=("parallel",),
                                vmem_limit_bytes=_vmem_limit_bytes())


# ------------------------------- Pallas kernels --------------------------------

def layernorm_kernel(x_ref, g_ref, b_ref, o_ref):
    o_ref[...] = _layernorm(x_ref[...], g_ref[...], b_ref[...])


def layernorm_pallas(x, gamma, beta):
    M, D = x.shape
    tm = _row_tile(M, max_rows=1024)  # pure streaming: big tiles amortize step overhead
    return pl.pallas_call(
        layernorm_kernel,
        out_shape=jax.ShapeDtypeStruct((M, D), x.dtype),
        grid=(M // tm,),
        in_specs=[pl.BlockSpec((tm, D), lambda i: (i, 0)),
                  pl.BlockSpec((1, D), lambda i: (0, 0)),
                  pl.BlockSpec((1, D), lambda i: (0, 0))],
        out_specs=pl.BlockSpec((tm, D), lambda i: (i, 0)),
        compiler_params=_compiler_params(),
    )(x, gamma, beta)


def afno_freq_kernel(re_ref, im_ref, w1r_ref, w1i_ref, b1_ref,
                     w2r_ref, w2i_ref, b2r_ref, b2i_ref,
                     ore_ref, oim_ref, *, lam):
    # Complex block-diagonal 2-layer frequency MLP on packed real weights.
    # bf16 operands, f32 accumulation.  ReLU then softshrink(lam) on a value
    # collapses to max(y - lam, 0) (negative softshrink branch is dead).
    h = (jnp.dot(re_ref[...], w1r_ref[...], preferred_element_type=jnp.float32)
         + jnp.dot(im_ref[...], w1i_ref[...], preferred_element_type=jnp.float32)
         + b1_ref[...])
    h = jnp.maximum(h, 0.0).astype(jnp.bfloat16)                       # (tm, 2D)
    yr = jnp.dot(h, w2r_ref[...], preferred_element_type=jnp.float32) + b2r_ref[...]
    yi = jnp.dot(h, w2i_ref[...], preferred_element_type=jnp.float32) + b2i_ref[...]
    ore_ref[...] = jnp.maximum(yr - lam, 0.0)
    oim_ref[...] = jnp.maximum(yi - lam, 0.0)


def afno_freq_pallas(zr, zi, prep, sparsity):
    M, D = zr.shape
    tm = _row_tile(M, max_rows=512)
    row = pl.BlockSpec((tm, D), lambda i: (i, 0))
    w1s = pl.BlockSpec((D, 2 * D), lambda i: (0, 0))
    w2s = pl.BlockSpec((2 * D, D), lambda i: (0, 0))
    b1s = pl.BlockSpec((1, 2 * D), lambda i: (0, 0))
    b2s = pl.BlockSpec((1, D), lambda i: (0, 0))
    kernel = functools.partial(afno_freq_kernel, lam=float(sparsity))
    return pl.pallas_call(
        kernel,
        out_shape=(jax.ShapeDtypeStruct((M, D), jnp.float32),
                   jax.ShapeDtypeStruct((M, D), jnp.float32)),
        grid=(M // tm,),
        in_specs=[row, row, w1s, w1s, b1s, w2s, w2s, b2s, b2s],
        out_specs=(row, row),
        compiler_params=_compiler_params(),
    )(zr, zi, prep["afno_w1_re"], prep["afno_w1_im"], prep["afno_b1"],
      prep["afno_w2_re"], prep["afno_w2_im"], prep["afno_b2_re"], prep["afno_b2_im"])


def ln_mlp_kernel(y_ref, res_ref, g1_ref, be1_ref, g2_ref, be2_ref,
                  w1_ref, b1_ref, w2_ref, b2_ref, o_ref):
    # x   = irfft_out + LN1(residual)   (AFNO's internal residual; LN1 recomputed
    #                                    in-kernel to avoid a 3rd M x D HBM stream)
    # out = GELU(LN2(x) @ W1 + b1) @ W2 + b2 + residual
    res = res_ref[...]
    x = y_ref[...] + _layernorm(res, g1_ref[...], be1_ref[...])
    xn = _layernorm(x, g2_ref[...], be2_ref[...])
    h = _gelu_tanh(
        jnp.dot(xn.astype(jnp.bfloat16), w1_ref[...],
                preferred_element_type=jnp.float32) + b1_ref[...])
    out = jnp.dot(h.astype(jnp.bfloat16), w2_ref[...],
                  preferred_element_type=jnp.float32) + b2_ref[...]
    o_ref[...] = out + res


def ln_mlp_pallas(fft_out, residual, prep):
    M, D = fft_out.shape
    H = prep["fc1_w"].shape[1]
    # Bound the (tm, H) f32 GELU intermediate to ~3 MiB so it does not spill into
    # Mosaic internal VMEM scratch on v7x (e.g. tm=256 at H=3072).
    max_rows = max(8, min(512, ((3 << 20) // (4 * H)) // 8 * 8))
    tm = _row_tile(M, max_rows=max_rows)
    row = pl.BlockSpec((tm, D), lambda i: (i, 0))
    vec = pl.BlockSpec((1, D), lambda i: (0, 0))
    return pl.pallas_call(
        ln_mlp_kernel,
        out_shape=jax.ShapeDtypeStruct((M, D), jnp.float32),
        grid=(M // tm,),
        in_specs=[row, row, vec, vec, vec, vec,
                  pl.BlockSpec((D, H), lambda i: (0, 0)),
                  pl.BlockSpec((1, H), lambda i: (0, 0)),
                  pl.BlockSpec((H, D), lambda i: (0, 0)),
                  vec],
        out_specs=row,
        # Reuse fft_out's HBM buffer for the block output (same shape/dtype and
        # identical in/out index maps -> each tile is consumed before it is
        # overwritten, so the alias is safe).
        input_output_aliases={0: 0},
        compiler_params=_compiler_params(),
    )(fft_out, residual, prep["ln1_g"], prep["ln1_b"], prep["ln2_g"], prep["ln2_b"],
      prep["fc1_w"], prep["fc1_b"], prep["fc2_w"], prep["fc2_b"])


# ------------------------- one-time parameter packing ---------------------------

def _block_diag(blocks):
    nb, bs, _ = blocks.shape
    eye = jnp.eye(nb, dtype=blocks.dtype)
    return jnp.einsum("lmn,lk->lmkn", blocks, eye).reshape(nb * bs, nb * bs)


def prepare_params(p):
    """Precompute (once, outside the forward path) packed / bf16 weights."""
    D = p["ln1_g"].shape[0]
    H = p["fc1_w"].shape[1]
    w1r, w1i = _block_diag(p["afno_w1"][0]), _block_diag(p["afno_w1"][1])
    w2r, w2i = _block_diag(p["afno_w2"][0]), _block_diag(p["afno_w2"][1])
    b1r, b1i = p["afno_b1"][0].reshape(-1), p["afno_b1"][1].reshape(-1)
    b2r, b2i = p["afno_b2"][0].reshape(-1), p["afno_b2"][1].reshape(-1)
    return {
        "ln1_g": p["ln1_g"].reshape(1, D).astype(jnp.float32),
        "ln1_b": p["ln1_b"].reshape(1, D).astype(jnp.float32),
        "ln2_g": p["ln2_g"].reshape(1, D).astype(jnp.float32),
        "ln2_b": p["ln2_b"].reshape(1, D).astype(jnp.float32),
        # layer 1:  [re1|im1]_pre = re @ W1_re + im @ W1_im + [b1r|b1i]
        "afno_w1_re": jnp.concatenate([w1r, w1i], axis=1).astype(jnp.bfloat16),   # (D, 2D)
        "afno_w1_im": jnp.concatenate([-w1i, w1r], axis=1).astype(jnp.bfloat16),  # (D, 2D)
        "afno_b1": jnp.concatenate([b1r, b1i]).reshape(1, 2 * D).astype(jnp.float32),
        # layer 2:  yr = h @ W2_re + b2r ; yi = h @ W2_im + b2i
        "afno_w2_re": jnp.concatenate([w2r, -w2i], axis=0).astype(jnp.bfloat16),  # (2D, D)
        "afno_w2_im": jnp.concatenate([w2i, w2r], axis=0).astype(jnp.bfloat16),   # (2D, D)
        "afno_b2_re": b2r.reshape(1, D).astype(jnp.float32),
        "afno_b2_im": b2i.reshape(1, D).astype(jnp.float32),
        "fc1_w": p["fc1_w"].astype(jnp.bfloat16),
        "fc1_b": p["fc1_b"].reshape(1, H).astype(jnp.float32),
        "fc2_w": p["fc2_w"].astype(jnp.bfloat16),
        "fc2_b": p["fc2_b"].reshape(1, D).astype(jnp.float32),
    }


# ------------------------------- glue / wrapper ---------------------------------

def block_forward(x, prep, h, w, sparsity):
    B, HW, D = x.shape
    assert HW == h * w
    wf = w // 2 + 1
    x2 = x.reshape(B * HW, D)

    # --- norm1 (Pallas); feeds the FFT and is the AFNO internal residual ---
    normed1 = layernorm_pallas(x2, prep["ln1_g"], prep["ln1_b"])

    # --- AFNO: rfft2 (plain JAX) -> frequency MLP (Pallas, bf16 streams) -> irfft2 ---
    # TODO(synk): rfft2/irfft2 have no Pallas TPU primitive; they stay in jnp.fft.
    xf = jnp.fft.rfft2(normed1.reshape(B, h, w, D), axes=(1, 2), norm="ortho")
    zr = jnp.real(xf).reshape(B * h * wf, D).astype(jnp.bfloat16)
    zi = jnp.imag(xf).reshape(B * h * wf, D).astype(jnp.bfloat16)
    yr, yi = afno_freq_pallas(zr, zi, prep, sparsity)
    yc = jax.lax.complex(yr, yi).reshape(B, h, wf, D)
    yt = jnp.fft.irfft2(yc, s=(h, w), axes=(1, 2), norm="ortho")
    yt = yt.reshape(B * HW, D).astype(jnp.float32)

    # --- (+LN1(res)) -> LN2 -> GELU MLP -> (+residual), fused in one Pallas kernel ---
    out = ln_mlp_pallas(yt, x2, prep)
    return out.reshape(B, HW, D)


# ----------------------------- pure-JAX reference -------------------------------

def reference_block(x, p, h, w, num_blocks, sparsity):
    B, HW, D = x.shape
    bs = D // num_blocks

    def ln(v, g, b):
        m = jnp.mean(v, -1, keepdims=True)
        va = jnp.mean((v - m) ** 2, -1, keepdims=True)
        return (v - m) / jnp.sqrt(va + 1e-5) * g + b

    residual = x
    xn = ln(x, p["ln1_g"], p["ln1_b"])

    bias = xn
    xf = jnp.fft.rfft2(xn.reshape(B, h, w, D), axes=(1, 2), norm="ortho")
    xf = xf.reshape(B, h, w // 2 + 1, num_blocks, bs)
    mul = lambda inp, wgt: jnp.einsum("...lm,lmn->...ln", inp, wgt)
    w1, w2, b1, b2 = p["afno_w1"], p["afno_w2"], p["afno_b1"], p["afno_b2"]
    xr1 = jax.nn.relu(mul(xf.real, w1[0]) - mul(xf.imag, w1[1]) + b1[0])
    xi1 = jax.nn.relu(mul(xf.real, w1[1]) + mul(xf.imag, w1[0]) + b1[1])
    xr2 = jax.nn.relu(mul(xr1, w2[0]) - mul(xi1, w2[1]) + b2[0])
    xi2 = jax.nn.relu(mul(xr1, w2[1]) + mul(xi1, w2[0]) + b2[1])
    st = _softshrink(jnp.stack([xr2, xi2], axis=-1), sparsity)
    xc = (st[..., 0] + 1j * st[..., 1]).reshape(B, h, w // 2 + 1, D)
    xs = jnp.fft.irfft2(xc, s=(h, w), axes=(1, 2), norm="ortho").reshape(B, HW, D)
    xs = xs + bias

    xn2 = ln(xs, p["ln2_g"], p["ln2_b"])
    hdn = jax.nn.gelu(xn2 @ p["fc1_w"] + p["fc1_b"], approximate=False)
    out = hdn @ p["fc2_w"] + p["fc2_b"]
    return out + residual


# --------------------------------- parameters -----------------------------------

def init_params(key, D, H, num_blocks):
    bs = D // num_blocks
    ks = jax.random.split(key, 8)
    scale = 0.02
    unif = lambda k, shp, bound: jax.random.uniform(k, shp, jnp.float32, -bound, bound)
    return {
        "ln1_g": jnp.ones((D,), jnp.float32), "ln1_b": jnp.zeros((D,), jnp.float32),
        "ln2_g": jnp.ones((D,), jnp.float32), "ln2_b": jnp.zeros((D,), jnp.float32),
        "afno_w1": scale * jax.random.normal(ks[0], (2, num_blocks, bs, bs), jnp.float32),
        "afno_w2": scale * jax.random.normal(ks[1], (2, num_blocks, bs, bs), jnp.float32),
        "afno_b1": scale * jax.random.normal(ks[2], (2, num_blocks, bs), jnp.float32),
        "afno_b2": scale * jax.random.normal(ks[3], (2, num_blocks, bs), jnp.float32),
        "fc1_w": unif(ks[4], (D, H), 1.0 / np.sqrt(D)),
        "fc1_b": unif(ks[5], (H,), 1.0 / np.sqrt(D)),
        "fc2_w": unif(ks[6], (H, D), 1.0 / np.sqrt(H)),
        "fc2_b": unif(ks[7], (D,), 1.0 / np.sqrt(H)),
    }


# ------------------------------------ main ---------------------------------------

if __name__ == "__main__":
    B, H_SP, W_SP = 2, 8, 8          # batch, spatial grid h x w
    D, NUM_BLOCKS = 64, 8            # embed_dim, AFNO blocks (block_size = 8)
    MLP_RATIO, SPARSITY = 4.0, 0.01
    HW = H_SP * W_SP
    HID = int(D * MLP_RATIO)

    key = jax.random.PRNGKey(0)
    kx, kp = jax.random.split(key)
    x = jax.random.normal(kx, (B, HW, D), dtype=jnp.float32)
    params = init_params(kp, D, HID, NUM_BLOCKS)
    prep = prepare_params(params)    # one-time weight packing (block-diag, bf16)

    fwd = jax.jit(block_forward, static_argnums=(2, 3, 4))
    out = jax.block_until_ready(fwd(x, prep, H_SP, W_SP, SPARSITY))

    ref = reference_block(x, params, H_SP, W_SP, NUM_BLOCKS, SPARSITY)
    err = float(jnp.max(jnp.abs(out - ref)))
    assert out.shape == (B, HW, D) and out.dtype == jnp.float32
    assert err < 5e-2, f"mismatch vs pure-JAX reference: max abs err = {err}"

    print("KERNEL_OK")
</pallas_src>

<mosaic_0001>
module attributes {stable_mosaic.version = 11 : i64} {
  func.func @layernorm_kernel(%arg0: i32, %arg1: memref<16x64xf32, #tpu.memory_space<vmem>>, %arg2: memref<1x64xf32, #tpu.memory_space<vmem>>, %arg3: memref<1x64xf32, #tpu.memory_space<vmem>>, %arg4: memref<16x64xf32, #tpu.memory_space<vmem>>) attributes {dimension_semantics = [#tpu.dimension_semantics<parallel>], iteration_bounds = array<i64: 8>, scalar_prefetch = 0 : i64, scratch_operands = 0 : i64, tpu.core_type = #tpu.core_type<tc>, window_params = [{transform_indices = @transform_0, window_bounds = array<i64: 16, 64>}, {pipeline_mode = #tpu.pipeline_mode<synchronous>, transform_indices = @transform_1, window_bounds = array<i64: 1, 64>}, {pipeline_mode = #tpu.pipeline_mode<synchronous>, transform_indices = @transform_2, window_bounds = array<i64: 1, 64>}, {transform_indices = @transform_3, window_bounds = array<i64: 16, 64>}]} {
    %c0 = arith.constant 0 : index
    %c0_0 = arith.constant 0 : index
    %0 = vector.load %arg1[%c0, %c0_0] : memref<16x64xf32, #tpu.memory_space<vmem>>, vector<16x64xf32>
    %c0_1 = arith.constant 0 : index
    %c0_2 = arith.constant 0 : index
    %1 = vector.load %arg2[%c0_1, %c0_2] : memref<1x64xf32, #tpu.memory_space<vmem>>, vector<1x64xf32>
    %c0_3 = arith.constant 0 : index
    %c0_4 = arith.constant 0 : index
    %2 = vector.load %arg3[%c0_3, %c0_4] : memref<1x64xf32, #tpu.memory_space<vmem>>, vector<1x64xf32>
    %cst = arith.constant dense<0.000000e+00> : vector<16xf32>
    %3 = vector.multi_reduction <add>, %0, %cst [1] : vector<16x64xf32> to vector<16xf32>
    %4 = vector.shape_cast %3 : vector<16xf32> to vector<16x1xf32>
    %cst_5 = arith.constant 6.400000e+01 : f32
    %5 = vector.broadcast %cst_5 : f32 to vector<16x1xf32>
    %6 = arith.divf %4, %5 : vector<16x1xf32>
    %7 = vector.broadcast %6 : vector<16x1xf32> to vector<16x64xf32>
    %8 = arith.subf %0, %7 : vector<16x64xf32>
    %9 = arith.mulf %8, %8 : vector<16x64xf32>
    %cst_6 = arith.constant dense<0.000000e+00> : vector<16xf32>
    %10 = vector.multi_reduction <add>, %9, %cst_6 [1] : vector<16x64xf32> to vector<16xf32>
    %11 = vector.shape_cast %10 : vector<16xf32> to vector<16x1xf32>
    %cst_7 = arith.constant 6.400000e+01 : f32
    %12 = vector.broadcast %cst_7 : f32 to vector<16x1xf32>
    %13 = arith.divf %11, %12 : vector<16x1xf32>
    %14 = vector.broadcast %6 : vector<16x1xf32> to vector<16x64xf32>
    %15 = arith.subf %0, %14 : vector<16x64xf32>
    %cst_8 = arith.constant 9.99999974E-6 : f32
    %16 = vector.broadcast %cst_8 : f32 to vector<16x1xf32>
    %17 = arith.addf %13, %16 : vector<16x1xf32>
    %18 = math.rsqrt %17 : vector<16x1xf32>
    %19 = vector.broadcast %18 : vector<16x1xf32> to vector<16x64xf32>
    %20 = arith.mulf %15, %19 : vector<16x64xf32>
    %21 = vector.broadcast %1 : vector<1x64xf32> to vector<16x64xf32>
    %22 = arith.mulf %20, %21 : vector<16x64xf32>
    %23 = vector.broadcast %2 : vector<1x64xf32> to vector<16x64xf32>
    %24 = arith.addf %22, %23 : vector<16x64xf32>
    %c0_9 = arith.constant 0 : index
    %c0_10 = arith.constant 0 : index
    %25 = vector.load %arg4[%c0_9, %c0_10] : memref<16x64xf32, #tpu.memory_space<vmem>>, vector<16x64xf32>
    tpu.vector_store %arg4[%c0_9, %c0_10], %24 {strides = array<i32>} : memref<16x64xf32, #tpu.memory_space<vmem>>, vector<16x64xf32>,
    return
  }
  func.func @transform_0(%arg0: i32) -> (i32, i32) {
    %c0_i32 = arith.constant 0 : i32
    %c0_i32_0 = arith.constant 0 : i32
    return %arg0, %c0_i32 : i32, i32
  }
  func.func @transform_1(%arg0: i32) -> (i32, i32) {
    %c0_i32 = arith.constant 0 : i32
    %c0_i32_0 = arith.constant 0 : i32
    %c0_i32_1 = arith.constant 0 : i32
    return %c0_i32, %c0_i32_0 : i32, i32
  }
  func.func @transform_2(%arg0: i32) -> (i32, i32) {
    %c0_i32 = arith.constant 0 : i32
    %c0_i32_0 = arith.constant 0 : i32
    %c0_i32_1 = arith.constant 0 : i32
    return %c0_i32, %c0_i32_0 : i32, i32
  }
  func.func @transform_3(%arg0: i32) -> (i32, i32) {
    %c0_i32 = arith.constant 0 : i32
    %c0_i32_0 = arith.constant 0 : i32
    return %arg0, %c0_i32 : i32, i32
  }
}

module attributes {stable_mosaic.version = 11 : i64} {
  func.func @afno_freq_kernel(%arg0: i32, %arg1: memref<8x64xbf16, #tpu.memory_space<vmem>>, %arg2: memref<8x64xbf16, #tpu.memory_space<vmem>>, %arg3: memref<64x128xbf16, #tpu.memory_space<vmem>>, %arg4: memref<64x128xbf16, #tpu.memory_space<vmem>>, %arg5: memref<1x128xf32, #tpu.memory_space<vmem>>, %arg6: memref<128x64xbf16, #tpu.memory_space<vmem>>, %arg7: memref<128x64xbf16, #tpu.memory_space<vmem>>, %arg8: memref<1x64xf32, #tpu.memory_space<vmem>>, %arg9: memref<1x64xf32, #tpu.memory_space<vmem>>, %arg10: memref<8x64xf32, #tpu.memory_space<vmem>>, %arg11: memref<8x64xf32, #tpu.memory_space<vmem>>) attributes {dimension_semantics = [#tpu.dimension_semantics<parallel>], iteration_bounds = array<i64: 10>, scalar_prefetch = 0 : i64, scratch_operands = 0 : i64, tpu.core_type = #tpu.core_type<tc>, window_params = [{transform_indices = @transform_0, window_bounds = array<i64: 8, 64>}, {transform_indices = @transform_1, window_bounds = array<i64: 8, 64>}, {pipeline_mode = #tpu.pipeline_mode<synchronous>, transform_indices = @transform_2, window_bounds = array<i64: 64, 128>}, {pipeline_mode = #tpu.pipeline_mode<synchronous>, transform_indices = @transform_3, window_bounds = array<i64: 64, 128>}, {pipeline_mode = #tpu.pipeline_mode<synchronous>, transform_indices = @transform_4, window_bounds = array<i64: 1, 128>}, {pipeline_mode = #tpu.pipeline_mode<synchronous>, transform_indices = @transform_5, window_bounds = array<i64: 128, 64>}, {pipeline_mode = #tpu.pipeline_mode<synchronous>, transform_indices = @transform_6, window_bounds = array<i64: 128, 64>}, {pipeline_mode = #tpu.pipeline_mode<synchronous>, transform_indices = @transform_7, window_bounds = array<i64: 1, 64>}, {pipeline_mode = #tpu.pipeline_mode<synchronous>, transform_indices = @transform_8, window_bounds = array<i64: 1, 64>}, {transform_indices = @transform_9, window_bounds = array<i64: 8, 64>}, {transform_indices = @transform_10, window_bounds = array<i64: 8, 64>}]} {
    %c0 = arith.constant 0 : index
    %c0_0 = arith.constant 0 : index
    %0 = vector.load %arg1[%c0, %c0_0] : memref<8x64xbf16, #tpu.memory_space<vmem>>, vector<8x64xbf16>
    %c0_1 = arith.constant 0 : index
    %c0_2 = arith.constant 0 : index
    %1 = vector.load %arg3[%c0_1, %c0_2] : memref<64x128xbf16, #tpu.memory_space<vmem>>, vector<64x128xbf16>
    %cst = arith.constant dense<0.000000e+00> : vector<8x128xf32>
    %2 = tpu.matmul %0, %1, %cst {dimension_numbers = #tpu.dot_dimension_numbers<[1], [0], [0], [1], [0, 0, 1, 1], [], []>} : vector<8x64xbf16>, vector<64x128xbf16>, vector<8x128xf32> -> vector<8x128xf32>
    %c0_3 = arith.constant 0 : index
    %c0_4 = arith.constant 0 : index
    %3 = vector.load %arg2[%c0_3, %c0_4] : memref<8x64xbf16, #tpu.memory_space<vmem>>, vector<8x64xbf16>
    %c0_5 = arith.constant 0 : index
    %c0_6 = arith.constant 0 : index
    %4 = vector.load %arg4[%c0_5, %c0_6] : memref<64x128xbf16, #tpu.memory_space<vmem>>, vector<64x128xbf16>
    %cst_7 = arith.constant dense<0.000000e+00> : vector<8x128xf32>
    %5 = tpu.matmul %3, %4, %cst_7 {dimension_numbers = #tpu.dot_dimension_numbers<[1], [0], [0], [1], [0, 0, 1, 1], [], []>} : vector<8x64xbf16>, vector<64x128xbf16>, vector<8x128xf32> -> vector<8x128xf32>
    %6 = arith.addf %2, %5 : vector<8x128xf32>
    %c0_8 = arith.constant 0 : index
    %c0_9 = arith.constant 0 : index
    %7 = vector.load %arg5[%c0_8, %c0_9] : memref<1x128xf32, #tpu.memory_space<vmem>>, vector<1x128xf32>
    %8 = vector.broadcast %7 : vector<1x128xf32> to vector<8x128xf32>
    %9 = arith.addf %6, %8 : vector<8x128xf32>
    %cst_10 = arith.constant 0.000000e+00 : f32
    %10 = vector.broadcast %cst_10 : f32 to vector<8x128xf32>
    %11 = arith.maximumf %9, %10 : vector<8x128xf32>
    %12 = arith.truncf %11 : vector<8x128xf32> to vector<8x128xbf16>
    %c0_11 = arith.constant 0 : index
    %c0_12 = arith.constant 0 : index
    %13 = vector.load %arg6[%c0_11, %c0_12] : memref<128x64xbf16, #tpu.memory_space<vmem>>, vector<128x64xbf16>
    %cst_13 = arith.constant dense<0.000000e+00> : vector<8x64xf32>
    %14 = tpu.matmul %12, %13, %cst_13 {dimension_numbers = #tpu.dot_dimension_numbers<[1], [0], [0], [1], [0, 0, 1, 1], [], []>} : vector<8x128xbf16>, vector<128x64xbf16>, vector<8x64xf32> -> vector<8x64xf32>
    %c0_14 = arith.constant 0 : index
    %c0_15 = arith.constant 0 : index
    %15 = vector.load %arg8[%c0_14, %c0_15] : memref<1x64xf32, #tpu.memory_space<vmem>>, vector<1x64xf32>
    %16 = vector.broadcast %15 : vector<1x64xf32> to vector<8x64xf32>
    %17 = arith.addf %14, %16 : vector<8x64xf32>
    %c0_16 = arith.constant 0 : index
    %c0_17 = arith.constant 0 : index
    %18 = vector.load %arg7[%c0_16, %c0_17] : memref<128x64xbf16, #tpu.memory_space<vmem>>, vector<128x64xbf16>
    %cst_18 = arith.constant dense<0.000000e+00> : vector<8x64xf32>
    %19 = tpu.matmul %12, %18, %cst_18 {dimension_numbers = #tpu.dot_dimension_numbers<[1], [0], [0], [1], [0, 0, 1, 1], [], []>} : vector<8x128xbf16>, vector<128x64xbf16>, vector<8x64xf32> -> vector<8x64xf32>
    %c0_19 = arith.constant 0 : index
    %c0_20 = arith.constant 0 : index
    %20 = vector.load %arg9[%c0_19, %c0_20] : memref<1x64xf32, #tpu.memory_space<vmem>>, vector<1x64xf32>
    %21 = vector.broadcast %20 : vector<1x64xf32> to vector<8x64xf32>
    %22 = arith.addf %19, %21 : vector<8x64xf32>
    %cst_21 = arith.constant 0.00999999977 : f32
    %23 = vector.broadcast %cst_21 : f32 to vector<8x64xf32>
    %24 = arith.subf %17, %23 : vector<8x64xf32>
    %cst_22 = arith.constant 0.000000e+00 : f32
    %25 = vector.broadcast %cst_22 : f32 to vector<8x64xf32>
    %26 = arith.maximumf %24, %25 : vector<8x64xf32>
    %c0_23 = arith.constant 0 : index
    %c0_24 = arith.constant 0 : index
    %27 = vector.load %arg10[%c0_23, %c0_24] : memref<8x64xf32, #tpu.memory_space<vmem>>, vector<8x64xf32>
    tpu.vector_store %arg10[%c0_23, %c0_24], %26 {strides = array<i32>} : memref<8x64xf32, #tpu.memory_space<vmem>>, vector<8x64xf32>,
    %cst_25 = arith.constant 0.00999999977 : f32
    %28 = vector.broadcast %cst_25 : f32 to vector<8x64xf32>
    %29 = arith.subf %22, %28 : vector<8x64xf32>
    %cst_26 = arith.constant 0.000000e+00 : f32
    %30 = vector.broadcast %cst_26 : f32 to vector<8x64xf32>
    %31 = arith.maximumf %29, %30 : vector<8x64xf32>
    %c0_27 = arith.constant 0 : index
    %c0_28 = arith.constant 0 : index
    %32 = vector.load %arg11[%c0_27, %c0_28] : memref<8x64xf32, #tpu.memory_space<vmem>>, vector<8x64xf32>
    tpu.vector_store %arg11[%c0_27, %c0_28], %31 {strides = array<i32>} : memref<8x64xf32, #tpu.memory_space<vmem>>, vector<8x64xf32>,
    return
  }
  func.func @transform_0(%arg0: i32) -> (i32, i32) {
    %c0_i32 = arith.constant 0 : i32
    %c0_i32_0 = arith.constant 0 : i32
    return %arg0, %c0_i32 : i32, i32
  }
  func.func @transform_1(%arg0: i32) -> (i32, i32) {
    %c0_i32 = arith.constant 0 : i32
    %c0_i32_0 = arith.constant 0 : i32
    return %arg0, %c0_i32 : i32, i32
  }
  func.func @transform_2(%arg0: i32) -> (i32, i32) {
    %c0_i32 = arith.constant 0 : i32
    %c0_i32_0 = arith.constant 0 : i32
    %c0_i32_1 = arith.constant 0 : i32
    return %c0_i32, %c0_i32_0 : i32, i32
  }
  func.func @transform_3(%arg0: i32) -> (i32, i32) {
    %c0_i32 = arith.constant 0 : i32
    %c0_i32_0 = arith.constant 0 : i32
    %c0_i32_1 = arith.constant 0 : i32
    return %c0_i32, %c0_i32_0 : i32, i32
  }
  func.func @transform_4(%arg0: i32) -> (i32, i32) {
    %c0_i32 = arith.constant 0 : i32
    %c0_i32_0 = arith.constant 0 : i32
    %c0_i32_1 = arith.constant 0 : i32
    return %c0_i32, %c0_i32_0 : i32, i32
  }
  func.func @transform_5(%arg0: i32) -> (i32, i32) {
    %c0_i32 = arith.constant 0 : i32
    %c0_i32_0 = arith.constant 0 : i32
    %c0_i32_1 = arith.constant 0 : i32
    return %c0_i32, %c0_i32_0 : i32, i32
  }
  func.func @transform_6(%arg0: i32) -> (i32, i32) {
    %c0_i32 = arith.constant 0 : i32
    %c0_i32_0 = arith.constant 0 : i32
    %c0_i32_1 = arith.constant 0 : i32
    return %c0_i32, %c0_i32_0 : i32, i32
  }
  func.func @transform_7(%arg0: i32) -> (i32, i32) {
    %c0_i32 = arith.constant 0 : i32
    %c0_i32_0 = arith.constant 0 : i32
    %c0_i32_1 = arith.constant 0 : i32
    return %c0_i32, %c0_i32_0 : i32, i32
  }
  func.func @transform_8(%arg0: i32) -> (i32, i32) {
    %c0_i32 = arith.constant 0 : i32
    %c0_i32_0 = arith.constant 0 : i32
    %c0_i32_1 = arith.constant 0 : i32
    return %c0_i32, %c0_i32_0 : i32, i32
  }
  func.func @transform_9(%arg0: i32) -> (i32, i32) {
    %c0_i32 = arith.constant 0 : i32
    %c0_i32_0 = arith.constant 0 : i32
    return %arg0, %c0_i32 : i32, i32
  }
  func.func @transform_10(%arg0: i32) -> (i32, i32) {
    %c0_i32 = arith.constant 0 : i32
    %c0_i32_0 = arith.constant 0 : i32
    return %arg0, %c0_i32 : i32, i32
  }
}

module attributes {stable_mosaic.version = 11 : i64} {
  func.func @ln_mlp_kernel(%arg0: i32, %arg1: memref<16x64xf32, #tpu.memory_space<vmem>>, %arg2: memref<16x64xf32, #tpu.memory_space<vmem>>, %arg3: memref<1x64xf32, #tpu.memory_space<vmem>>, %arg4: memref<1x64xf32, #tpu.memory_space<vmem>>, %arg5: memref<1x64xf32, #tpu.memory_space<vmem>>, %arg6: memref<1x64xf32, #tpu.memory_space<vmem>>, %arg7: memref<64x256xbf16, #tpu.memory_space<vmem>>, %arg8: memref<1x256xf32, #tpu.memory_space<vmem>>, %arg9: memref<256x64xbf16, #tpu.memory_space<vmem>>, %arg10: memref<1x64xf32, #tpu.memory_space<vmem>>, %arg11: memref<16x64xf32, #tpu.memory_space<vmem>>) attributes {dimension_semantics = [#tpu.dimension_semantics<parallel>], iteration_bounds = array<i64: 8>, scalar_prefetch = 0 : i64, scratch_operands = 0 : i64, tpu.core_type = #tpu.core_type<tc>, window_params = [{transform_indices = @transform_0, window_bounds = array<i64: 16, 64>}, {transform_indices = @transform_1, window_bounds = array<i64: 16, 64>}, {pipeline_mode = #tpu.pipeline_mode<synchronous>, transform_indices = @transform_2, window_bounds = array<i64: 1, 64>}, {pipeline_mode = #tpu.pipeline_mode<synchronous>, transform_indices = @transform_3, window_bounds = array<i64: 1, 64>}, {pipeline_mode = #tpu.pipeline_mode<synchronous>, transform_indices = @transform_4, window_bounds = array<i64: 1, 64>}, {pipeline_mode = #tpu.pipeline_mode<synchronous>, transform_indices = @transform_5, window_bounds = array<i64: 1, 64>}, {pipeline_mode = #tpu.pipeline_mode<synchronous>, transform_indices = @transform_6, window_bounds = array<i64: 64, 256>}, {pipeline_mode = #tpu.pipeline_mode<synchronous>, transform_indices = @transform_7, window_bounds = array<i64: 1, 256>}, {pipeline_mode = #tpu.pipeline_mode<synchronous>, transform_indices = @transform_8, window_bounds = array<i64: 256, 64>}, {pipeline_mode = #tpu.pipeline_mode<synchronous>, transform_indices = @transform_9, window_bounds = array<i64: 1, 64>}, {transform_indices = @transform_10, window_bounds = array<i64: 16, 64>}]} {
    %c0 = arith.constant 0 : index
    %c0_0 = arith.constant 0 : index
    %0 = vector.load %arg2[%c0, %c0_0] : memref<16x64xf32, #tpu.memory_space<vmem>>, vector<16x64xf32>
    %c0_1 = arith.constant 0 : index
    %c0_2 = arith.constant 0 : index
    %1 = vector.load %arg1[%c0_1, %c0_2] : memref<16x64xf32, #tpu.memory_space<vmem>>, vector<16x64xf32>
    %c0_3 = arith.constant 0 : index
    %c0_4 = arith.constant 0 : index
    %2 = vector.load %arg3[%c0_3, %c0_4] : memref<1x64xf32, #tpu.memory_space<vmem>>, vector<1x64xf32>
    %c0_5 = arith.constant 0 : index
    %c0_6 = arith.constant 0 : index
    %3 = vector.load %arg4[%c0_5, %c0_6] : memref<1x64xf32, #tpu.memory_space<vmem>>, vector<1x64xf32>
    %cst = arith.constant dense<0.000000e+00> : vector<16xf32>
    %4 = vector.multi_reduction <add>, %0, %cst [1] : vector<16x64xf32> to vector<16xf32>
    %5 = vector.shape_cast %4 : vector<16xf32> to vector<16x1xf32>
    %cst_7 = arith.constant 6.400000e+01 : f32
    %6 = vector.broadcast %cst_7 : f32 to vector<16x1xf32>
    %7 = arith.divf %5, %6 : vector<16x1xf32>
    %8 = vector.broadcast %7 : vector<16x1xf32> to vector<16x64xf32>
    %9 = arith.subf %0, %8 : vector<16x64xf32>
    %10 = arith.mulf %9, %9 : vector<16x64xf32>
    %cst_8 = arith.constant dense<0.000000e+00> : vector<16xf32>
    %11 = vector.multi_reduction <add>, %10, %cst_8 [1] : vector<16x64xf32> to vector<16xf32>
    %12 = vector.shape_cast %11 : vector<16xf32> to vector<16x1xf32>
    %cst_9 = arith.constant 6.400000e+01 : f32
    %13 = vector.broadcast %cst_9 : f32 to vector<16x1xf32>
    %14 = arith.divf %12, %13 : vector<16x1xf32>
    %15 = vector.broadcast %7 : vector<16x1xf32> to vector<16x64xf32>
    %16 = arith.subf %0, %15 : vector<16x64xf32>
    %cst_10 = arith.constant 9.99999974E-6 : f32
    %17 = vector.broadcast %cst_10 : f32 to vector<16x1xf32>
    %18 = arith.addf %14, %17 : vector<16x1xf32>
    %19 = math.rsqrt %18 : vector<16x1xf32>
    %20 = vector.broadcast %19 : vector<16x1xf32> to vector<16x64xf32>
    %21 = arith.mulf %16, %20 : vector<16x64xf32>
    %22 = vector.broadcast %2 : vector<1x64xf32> to vector<16x64xf32>
    %23 = arith.mulf %21, %22 : vector<16x64xf32>
    %24 = vector.broadcast %3 : vector<1x64xf32> to vector<16x64xf32>
    %25 = arith.addf %23, %24 : vector<16x64xf32>
    %26 = arith.addf %1, %25 : vector<16x64xf32>
    %c0_11 = arith.constant 0 : index
    %c0_12 = arith.constant 0 : index
    %27 = vector.load %arg5[%c0_11, %c0_12] : memref<1x64xf32, #tpu.memory_space<vmem>>, vector<1x64xf32>
    %c0_13 = arith.constant 0 : index
    %c0_14 = arith.constant 0 : index
    %28 = vector.load %arg6[%c0_13, %c0_14] : memref<1x64xf32, #tpu.memory_space<vmem>>, vector<1x64xf32>
    %cst_15 = arith.constant dense<0.000000e+00> : vector<16xf32>
    %29 = vector.multi_reduction <add>, %26, %cst_15 [1] : vector<16x64xf32> to vector<16xf32>
    %30 = vector.shape_cast %29 : vector<16xf32> to vector<16x1xf32>
    %cst_16 = arith.constant 6.400000e+01 : f32
    %31 = vector.broadcast %cst_16 : f32 to vector<16x1xf32>
    %32 = arith.divf %30, %31 : vector<16x1xf32>
    %33 = vector.broadcast %32 : vector<16x1xf32> to vector<16x64xf32>
    %34 = arith.subf %26, %33 : vector<16x64xf32>
    %35 = arith.mulf %34, %34 : vector<16x64xf32>
    %cst_17 = arith.constant dense<0.000000e+00> : vector<16xf32>
    %36 = vector.multi_reduction <add>, %35, %cst_17 [1] : vector<16x64xf32> to vector<16xf32>
    %37 = vector.shape_cast %36 : vector<16xf32> to vector<16x1xf32>
    %cst_18 = arith.constant 6.400000e+01 : f32
    %38 = vector.broadcast %cst_18 : f32 to vector<16x1xf32>
    %39 = arith.divf %37, %38 : vector<16x1xf32>
    %40 = vector.broadcast %32 : vector<16x1xf32> to vector<16x64xf32>
    %41 = arith.subf %26, %40 : vector<16x64xf32>
    %cst_19 = arith.constant 9.99999974E-6 : f32
    %42 = vector.broadcast %cst_19 : f32 to vector<16x1xf32>
    %43 = arith.addf %39, %42 : vector<16x1xf32>
    %44 = math.rsqrt %43 : vector<16x1xf32>
    %45 = vector.broadcast %44 : vector<16x1xf32> to vector<16x64xf32>
    %46 = arith.mulf %41, %45 : vector<16x64xf32>
    %47 = vector.broadcast %27 : vector<1x64xf32> to vector<16x64xf32>
    %48 = arith.mulf %46, %47 : vector<16x64xf32>
    %49 = vector.broadcast %28 : vector<1x64xf32> to vector<16x64xf32>
    %50 = arith.addf %48, %49 : vector<16x64xf32>
    %51 = arith.truncf %50 : vector<16x64xf32> to vector<16x64xbf16>
    %c0_20 = arith.constant 0 : index
    %c0_21 = arith.constant 0 : index
    %52 = vector.load %arg7[%c0_20, %c0_21] : memref<64x256xbf16, #tpu.memory_space<vmem>>, vector<64x256xbf16>
    %cst_22 = arith.constant dense<0.000000e+00> : vector<16x256xf32>
    %53 = tpu.matmul %51, %52, %cst_22 {dimension_numbers = #tpu.dot_dimension_numbers<[1], [0], [0], [1], [0, 0, 1, 1], [], []>} : vector<16x64xbf16>, vector<64x256xbf16>, vector<16x256xf32> -> vector<16x256xf32>
    %c0_23 = arith.constant 0 : index
    %c0_24 = arith.constant 0 : index
    %54 = vector.load %arg8[%c0_23, %c0_24] : memref<1x256xf32, #tpu.memory_space<vmem>>, vector<1x256xf32>
    %55 = vector.broadcast %54 : vector<1x256xf32> to vector<16x256xf32>
    %56 = arith.addf %53, %55 : vector<16x256xf32>
    %cst_25 = arith.constant 5.000000e-01 : f32
    %57 = vector.broadcast %cst_25 : f32 to vector<16x256xf32>
    %58 = arith.mulf %57, %56 : vector<16x256xf32>
    %cst_26 = arith.constant 4.471500e-02 : f32
    %59 = vector.broadcast %cst_26 : f32 to vector<16x256xf32>
    %60 = arith.mulf %59, %56 : vector<16x256xf32>
    %61 = arith.mulf %60, %56 : vector<16x256xf32>
    %62 = arith.mulf %61, %56 : vector<16x256xf32>
    %63 = arith.addf %56, %62 : vector<16x256xf32>
    %cst_27 = arith.constant 0.797884583 : f32
    %64 = vector.broadcast %cst_27 : f32 to vector<16x256xf32>
    %65 = arith.mulf %64, %63 : vector<16x256xf32>
    %66 = math.tanh %65 : vector<16x256xf32>
    %cst_28 = arith.constant 1.000000e+00 : f32
    %67 = vector.broadcast %cst_28 : f32 to vector<16x256xf32>
    %68 = arith.addf %67, %66 : vector<16x256xf32>
    %69 = arith.mulf %58, %68 : vector<16x256xf32>
    %70 = arith.truncf %69 : vector<16x256xf32> to vector<16x256xbf16>
    %c0_29 = arith.constant 0 : index
    %c0_30 = arith.constant 0 : index
    %71 = vector.load %arg9[%c0_29, %c0_30] : memref<256x64xbf16, #tpu.memory_space<vmem>>, vector<256x64xbf16>
    %cst_31 = arith.constant dense<0.000000e+00> : vector<16x64xf32>
    %72 = tpu.matmul %70, %71, %cst_31 {dimension_numbers = #tpu.dot_dimension_numbers<[1], [0], [0], [1], [0, 0, 1, 1], [], []>} : vector<16x256xbf16>, vector<256x64xbf16>, vector<16x64xf32> -> vector<16x64xf32>
    %c0_32 = arith.constant 0 : index
    %c0_33 = arith.constant 0 : index
    %73 = vector.load %arg10[%c0_32, %c0_33] : memref<1x64xf32, #tpu.memory_space<vmem>>, vector<1x64xf32>
    %74 = vector.broadcast %73 : vector<1x64xf32> to vector<16x64xf32>
    %75 = arith.addf %72, %74 : vector<16x64xf32>
    %76 = arith.addf %75, %0 : vector<16x64xf32>
    %c0_34 = arith.constant 0 : index
    %c0_35 = arith.constant 0 : index
    %77 = vector.load %arg11[%c0_34, %c0_35] : memref<16x64xf32, #tpu.memory_space<vmem>>, vector<16x64xf32>
    tpu.vector_store %arg11[%c0_34, %c0_35], %76 {strides = array<i32>} : memref<16x64xf32, #tpu.memory_space<vmem>>, vector<16x64xf32>,
    return
  }
  func.func @transform_0(%arg0: i32) -> (i32, i32) {
    %c0_i32 = arith.constant 0 : i32
    %c0_i32_0 = arith.constant 0 : i32
    return %arg0, %c0_i32 : i32, i32
  }
  func.func @transform_1(%arg0: i32) -> (i32, i32) {
    %c0_i32 = arith.constant 0 : i32
    %c0_i32_0 = arith.constant 0 : i32
    return %arg0, %c0_i32 : i32, i32
  }
  func.func @transform_2(%arg0: i32) -> (i32, i32) {
    %c0_i32 = arith.constant 0 : i32
    %c0_i32_0 = arith.constant 0 : i32
    %c0_i32_1 = arith.constant 0 : i32
    return %c0_i32, %c0_i32_0 : i32, i32
  }
  func.func @transform_3(%arg0: i32) -> (i32, i32) {
    %c0_i32 = arith.constant 0 : i32
    %c0_i32_0 = arith.constant 0 : i32
    %c0_i32_1 = arith.constant 0 : i32
    return %c0_i32, %c0_i32_0 : i32, i32
  }
  func.func @transform_4(%arg0: i32) -> (i32, i32) {
    %c0_i32 = arith.constant 0 : i32
    %c0_i32_0 = arith.constant 0 : i32
    %c0_i32_1 = arith.constant 0 : i32
    return %c0_i32, %c0_i32_0 : i32, i32
  }
  func.func @transform_5(%arg0: i32) -> (i32, i32) {
    %c0_i32 = arith.constant 0 : i32
    %c0_i32_0 = arith.constant 0 : i32
    %c0_i32_1 = arith.constant 0 : i32
    return %c0_i32, %c0_i32_0 : i32, i32
  }
  func.func @transform_6(%arg0: i32) -> (i32, i32) {
    %c0_i32 = arith.constant 0 : i32
    %c0_i32_0 = arith.constant 0 : i32
    %c0_i32_1 = arith.constant 0 : i32
    return %c0_i32, %c0_i32_0 : i32, i32
  }
  func.func @transform_7(%arg0: i32) -> (i32, i32) {
    %c0_i32 = arith.constant 0 : i32
    %c0_i32_0 = arith.constant 0 : i32
    %c0_i32_1 = arith.constant 0 : i32
    return %c0_i32, %c0_i32_0 : i32, i32
  }
  func.func @transform_8(%arg0: i32) -> (i32, i32) {
    %c0_i32 = arith.constant 0 : i32
    %c0_i32_0 = arith.constant 0 : i32
    %c0_i32_1 = arith.constant 0 : i32
    return %c0_i32, %c0_i32_0 : i32, i32
  }
  func.func @transform_9(%arg0: i32) -> (i32, i32) {
    %c0_i32 = arith.constant 0 : i32
    %c0_i32_0 = arith.constant 0 : i32
    %c0_i32_1 = arith.constant 0 : i32
    return %c0_i32, %c0_i32_0 : i32, i32
  }
  func.func @transform_10(%arg0: i32) -> (i32, i32) {
    %c0_i32 = arith.constant 0 : i32
    %c0_i32_0 = arith.constant 0 : i32
    return %arg0, %c0_i32 : i32, i32
  }
}

</mosaic_0001>

<bundles_post_ra>
// kernel: reverse.1
= control target key start
LH: loop header
LB: loop body
LE: loop exit
PB: predicated region body
PF: predicated region fallthrough
CT: control target
= control target key end

     0   :  { %s80_s0 = inlined_call_operand.vmem [shape: f32[2,64,8,3], index: 0, kind: input, shape index: {}]   ;;  %s81_s1 = inlined_call_operand.vmem [shape: f32[2,64,8,3], index: 1, kind: output, shape index: {}]  }
   0x1   :  { %v24_v0 = vld [vmem:[%s80_s0 + $0x10] sm:$0xff]  ;;  %v25_v1 = vld [vmem:[%s80_s0 + $0x28] sm:$0xff]  ;;  %v29_v3 = vld [vmem:[%s80_s0 + $0x20] sm:$0xff] }
   0x2   :  { %v27_v2 = vld [vmem:[%s80_s0 + $0x8] sm:$0xff]  ;;  %4 = vst [vmem:[%s81_s1] sm:$0xff] %v24_v0  ;;  %26 = vst [vmem:[%s81_s1 + $0x18] sm:$0xff] %v25_v1  ;;  %v17_v4 = vld [vmem:[%s80_s0] sm:$0xff] }
   0x3   :  { %28 = vst [vmem:[%s81_s1 + $0x8] sm:$0xff] %v27_v2  ;;  %v32_v5 = vld [vmem:[%s80_s0 + $0x18] sm:$0xff]  ;;  %30 = vst [vmem:[%s81_s1 + $0x20] sm:$0xff] %v29_v3 }
   0x4   :  { %31 = vst [vmem:[%s81_s1 + $0x10] sm:$0xff] %v17_v4  ;;  %33 = vst [vmem:[%s81_s1 + $0x28] sm:$0xff] %v32_v5 }

// kernel: block_forward.3
= control target key start
LH: loop header
LB: loop body
LE: loop exit
PB: predicated region body
PF: predicated region fallthrough
CT: control target
= control target key end

     0   :  { %8 = vsyncpa [#allocation3], 0  ;;  %s579_s0 = inlined_call_operand.hbm [shape: f32[128,64], index: 0, kind: input, shape index: {}]   ;;  %s580_s1 = inlined_call_operand.vmem [shape: f32[1,64], index: 1, kind: input, shape index: {}]   ;;  %s581_s2 = inlined_call_operand.vmem [shape: f32[1,64], index: 2, kind: input, shape index: {}]   ;;  %s582_s3 = inlined_call_operand.vmem [shape: f32[128,64], index: 3, kind: output, shape index: {}]  }
   0x1   :  { %10 = vsyncpa [#allocation3 + $0x1], 0  ;;  %s460_s12 = smov 0   ;;  %s462_s13 = smov 0  }
   0x2   :  { %s464_s14 = smov 0   ;;  %s466_s15 = smov 0  }
   0x3 LB: > { %s310_s16 = sadd.s32 4294967295, %s435_s15   ;;  %s480_s17 = sadd.s32 1, %s435_s15   ;;  %s435_s15 = sphi %s466_s15, %s589_s15   ;;  %s431_s14 = sphi %s464_s14, %s588_s14   ;;  %s427_s13 = sphi %s462_s13, %s587_s13   ;;  %s423_s12 = sphi %s460_s12, %s586_s12  }
   0x4   : > { %s20_s18 = ssub.s32 %s435_s15, %s480_s17  ;;  %s23_s19 = sadd.s32 1, %s431_s14 }
   0x5   : > { %p21_p0 = scmp.eq.s32.totalorder %s20_s18, 0  ;;  %p30_p1 = scmp.ne.s32.totalorder %s431_s14, %s427_s13 }
   0x6   : > { %p31_p2 = scmp.eq.s32.totalorder %s435_s15, 0  ;;  %p36_p3 = scmp.ne.s32.totalorder %s427_s13, %s423_s12 }
   0x7   : > { %s490_s20 = scalar_select %p21_p0, %s431_s14, %s23_s19  }
   0x8   : > { %p32_p4 = por %p31_p2, %p30_p1  ;;  %p37_p5 = scmp.eq.s32.totalorder %s310_s16, 0 }
   0x9   : > { %p332_p6 = scmp.lt.s32.totalorder %s435_s15, 8  ;;  %s134_s22 = sand.u32 1, %s431_s14  }
   0xa   : > { %p495_p7 = por %p37_p5, %p36_p3  ;;  %s314_s23 = sshll.u32 %s134_s22, 4 }
   0xb   : > { %s325_s24 = sshll.u32 %s435_s15, 8  ;;  %s138_s28 = scalar_lea.vmem [#allocation2], %s314_s23 }
   0xc   : > { %s504_s27 = scalar_lea.hbm %s579_s0, %s325_s24  ;;  %s145_s29 = sshll.u32 %s138_s28, 4  ;;  %s506_s29 = int_to_ptr.vmem [resolvable:$true] %s145_s29 }
   0xd   : > { %p508_p8 = pnand %p332_p6, %p32_p4  ;;  %s513_s4 = scalar_lea.sflag [#allocation3], %s134_s22 }
   0xe   : > { %s371_s5 = scalar_lea.hbm %s504_s27, 256  ;;  %s376_s8 = scalar_lea.hbm %s579_s0, 2048 }
   0xf   : > { %p372_p10 = scmp.ne.s32.totalorder %s504_s27, %s371_s5  ;;  %p373_p11 = pneg %p508_p8 }
  0x10   : > { %p377_p0 = scmp.lt.u32.totalorder %s504_s27, %s579_s0  ;;  %p378_p1 = scmp.lt.u32.totalorder %s376_s8, %s371_s5 }
  0x11   : > { %p374_p12 = pnand %p373_p11, %p372_p10  ;;  %p380_p3 = scmp.lt.u32.totalorder %s371_s5, %s504_s27 }
  0x12   : > { %p379_p2 = por %p378_p1, %p377_p0 }
  0x13   : > { %p375_p13 = pneg %p374_p12 }
  0x14   : > { %p381_p4 = por %p380_p3, %p379_p2 }
  0x16   : > { %p382_p5 = pnand %p381_p4, %p375_p13 }
  0x18   : > { %385 = shalt.err (!%p382_p5)
}
  0x19   : > { %s386_s11 = scalar_lea.vmem %s506_s29, 256  ;;  %s437_s12 = smov [#allocation2]  }
  0x1a   : > { %p387_p6 = scmp.ne.s32.totalorder %s506_s29, %s386_s11  ;;  %s391_s18 = sshll.u32 %s437_s12, 4  ;;  %s392_s18 = int_to_ptr.vmem [resolvable:$false] %s391_s18 }
  0x1b   : > { %s393_s19 = scalar_lea.vmem %s392_s18, 512  ;;  %p394_p9 = scmp.lt.s32.totalorder %s506_s29, %s392_s18 }
  0x1c   : > { %p389_p10 = pnand %p387_p6, %p373_p11  ;;  %p395_p0 = scmp.lt.s32.totalorder %s393_s19, %s386_s11 }
  0x1e   : > { %p390_p12 = pneg %p389_p10  ;;  %p396_p1 = por %p395_p0, %p394_p9 }
  0x20   : > { %p397_p2 = pnand %p396_p1, %p390_p12 }
  0x22   : > { %400 = shalt.err (!%p397_p2)
}
  0x23   : > { %s438_s22 = smov 128   ;;  %s439_s23 = smov 8  }
  0x24   : > { %331 = dma.hbm_to_vmem [thread:$0]  (!%p508_p8), %s504_s27, 256, %s506_s29, %s513_s4, %s438_s22, %s438_s22, %s439_s23  }
  0x25   : > { %p153_p11 = scmp.lt.s32.totalorder %s435_s15, 9  ;;  %p585_p13 = scmp.ge.s32.totalorder %s435_s15, 1 }
  0x27   : > { %p154_p3 = pnand %p585_p13, %p153_p11 }
  0x28   : > { %s159_s24 = sand.u32 (!%p154_p3), 1, %s427_s13  }
  0x29   : > { %157 = sbr.rel (%p154_p3) target bundleno = 368 (0x170), region = 32  ;;  %s318_s25 = sshll.u32 (!%p154_p3), %s159_s24, 4 }
  0x2a   : > { %s160_s26 = scalar_lea.sflag (!%p154_p3), [#allocation3], %s159_s24  ;;  %s163_s28 = scalar_lea.vmem (!%p154_p3), [#allocation2], %s318_s25 }
  0x30   : > { %418 = dma.done.wait (%p495_p7), %s160_s26, 256  }
  0x31   : > { %420 = vsyncadd (%p495_p7), %s160_s26, 4294967040  ;;  %vm197_vm0 = vcmask 523264   ;;  %v193_v0 = vld [vmem:[%s163_s28] sm:$0xff]  ;;  %v194_v1 = vld [vmem:[%s163_s28 + $0x8] sm:$0xff]  ;;  %s319_s21 = sshll.u32 %s310_s16, 1 }
  0x32   : > { %v198_v2 = vsel %vm197_vm0, %v193_v0, 0.0  ;;  %v201_v3 = vsel %vm197_vm0, %v194_v1, 0.0  ;;  %p188_p7 = scmp.lt.s32.totalorder %s319_s21, 15  ;;  %v321_v21 = vld [vmem:[%s580_s1] ss:$0 sm:$0xff] }
  0x33   : > { %199 = vadd.xlane.f32.xlu0 %v198_v2  ;;  %v322_v23 = vld [vmem:[%s581_s2] ss:$0 sm:$0xff] }
  0x34   : > { %s591_s21 = smov (!%p188_p7, %s319_s21), 15 }
  0x35   : > { %s320_s30 = sshll.u32 %s591_s21, 3 }
  0x36   : > { %s191_s6 = scalar_lea.vmem %s582_s3, %s320_s30 }
  0x37   : > { %202 = vadd.xlane.f32.xlu0 %v201_v3 }
  0xc0   : > { %v200_v4 = vpop.xlane.xlu0 %199 }
  0xc1   : > { %v205_v5 = vmul.f32 0.015625, %v200_v4 }
  0xc3   : > { %v207_v6 = vsub.f32 %v193_v0, %v205_v5 }
  0xc4   : > { %v203_v7 = vpop.xlane.xlu0 %202 }
  0xc5   : > { %v206_v8 = vmul.f32 0.015625, %v203_v7  ;;  %v209_v9 = vmul.f32 %v207_v6, %v207_v6 }
  0xc7   : > { %v208_v10 = vsub.f32 %v194_v1, %v206_v8  ;;  %v211_v11 = vsel %vm197_vm0, %v209_v9, 0.0 }
  0xc8   : > { %212 = vadd.xlane.f32.xlu1 %v211_v11 }
  0xc9   : > { %v210_v12 = vmul.f32 %v208_v10, %v208_v10 }
  0xcb   : > { %v214_v13 = vsel %vm197_vm0, %v210_v12, 0.0 }
  0xcc   : > { %215 = vadd.xlane.f32.xlu1 %v214_v13 }
 0x155   : > { %v213_v14 = vpop.xlane.xlu1 %212 }
 0x156   : > { %v217_v15 = vmul.f32 0.015625, %v213_v14 }
 0x158   : > { %v219_v16 = vadd.f32 1e-05, %v217_v15 }
 0x159   : > { %v216_v17 = vpop.xlane.xlu1 %215 }
 0x15a   : > { %367 = vrsqrt.f32 %v219_v16  ;;  %v218_v18 = vmul.f32 0.015625, %v216_v17 }
 0x15c   : > { %v220_v19 = vadd.f32 1e-05, %v218_v18 }
 0x15e   : > { %369 = vrsqrt.f32 %v220_v19 }
 0x164   : > { %v368_v20 = vpop.eup %367 }
 0x165   : > { %v223_v22 = vmul.f32 %v368_v20, %v207_v6 }
 0x167   : > { %v231_v24 = vmul.f32 %v321_v21, %v223_v22 }
 0x168   : > { %v370_v25 = vpop.eup %369 }
 0x169   : > { %v239_v26 = vadd.f32 %v322_v23, %v231_v24  ;;  %v224_v27 = vmul.f32 %v370_v25, %v208_v10 }
 0x16b   : > { %241 = vst.msk [vmem:[%s191_s6] sm:$0xff] %vm197_vm0, %v239_v26  ;;  %v232_v28 = vmul.f32 %v321_v21, %v224_v27 }
 0x16d   : > { %v240_v29 = vadd.f32 %v322_v23, %v232_v28 }
 0x16f   : > { %242 = vst.msk [vmem:[%s191_s6 + $0x8] sm:$0xff] %vm197_vm0, %v240_v29 }
 0x170 PF: > { %p13_p8 = scmp.ge.s32.totalorder %s480_s17, 10   ;;  %s586_s12 = smov %s427_s13 }
 0x171   : > { %s587_s13 = smov %s431_s14  ;;  %s588_s14 = smov %s490_s20 }
 0x172   : > { %s589_s15 = smov %s480_s17  ;;  %15 = sbr.rel (!%p13_p8) target bundleno = 3 (0x3), region = 72 }
 0x179   :  { %265 = vsyncpa [#allocation3], 1 }
 0x17a   :  { %267 = vsyncpa [#allocation3 + $0x1], 1 }

// kernel: block_forward.4
= control target key start
LH: loop header
LB: loop body
LE: loop exit
PB: predicated region body
PF: predicated region fallthrough
CT: control target
= control target key end

     0   :  { %s1104_s13 = smov 0   ;;  %s1248_s0 = inlined_call_operand.vmem [shape: bf16[80,64], index: 0, kind: input, shape index: {}]   ;;  %s1249_s1 = inlined_call_operand.vmem [shape: bf16[80,64], index: 1, kind: input, shape index: {}]   ;;  %s1250_s2 = inlined_call_operand.vmem [shape: bf16[64,128], index: 2, kind: input, shape index: {}]   ;;  %s1251_s3 = inlined_call_operand.vmem [shape: bf16[64,128], index: 3, kind: input, shape index: {}]   ;;  %s1252_s4 = inlined_call_operand.vmem [shape: f32[1,128], index: 4, kind: input, shape index: {}]   ;;  %s1253_s5 = inlined_call_operand.vmem [shape: bf16[128,64], index: 5, kind: input, shape index: {}]   ;;  %s1254_s6 = inlined_call_operand.vmem [shape: bf16[128,64], index: 6, kind: input, shape index: {}]   ;;  %s1255_s7 = inlined_call_operand.vmem [shape: f32[1,64], index: 7, kind: input, shape index: {}]   ;;  %s1256_s8 = inlined_call_operand.vmem [shape: f32[1,64], index: 8, kind: input, shape index: {}]   ;;  %s1257_s9 = inlined_call_operand.vmem [shape: f32[80,64], index: 9, kind: output, shape index: {0}]   ;;  %s1258_s10 = inlined_call_operand.vmem [shape: f32[80,64], index: 10, kind: output, shape index: {1}]  }
   0x1 LB: > { %s871_s14 = sadd.s32 4294967295, %s1045_s13   ;;  %p875_p0 = scmp.ge.s32.totalorder %s1045_s13, 1  ;;  %s1045_s13 = sphi %s1104_s13, %s21_s13  }
   0x2   : > { %p323_p1 = scmp.lt.s32.totalorder %s1045_s13, 11 }
   0x4   : > { %p324_p2 = pnand %p875_p0, %p323_p1 }
   0x5   : > { %v1015_v0 = vld [vmem:[%s1251_s3] sm:$0xff] (!%p324_p2)   ;;  %v1047_v1 = vmov (!%p324_p2), 0.0   ;;  %v1017_v3 = vld [vmem:[%s1251_s3 + $0x8] sm:$0xff] (!%p324_p2)   ;;  %vm1048_vm0 = vmmov (!%p324_p2), 0   ;;  %p367_p3 = scmp.lt.s32.totalorder (!%p324_p2), %s871_s14, 9  ;;  %v1019_v5 = vld [vmem:[%s1251_s3 + $0x10] sm:$0xff] (!%p324_p2)  }
   0x6   : > { %327 = sbr.rel (%p324_p2) target bundleno = 462 (0x1ce), region = 56  ;;  %941 = vmatprep.subr.bf16.mxu0 (!%p324_p2), %v1047_v1  ;;  %953 = vmatprep.subr.bf16.mxu1 (!%p324_p2), %v1047_v1  ;;  %v1016_v2 = vld [vmem:[%s1250_s2] sm:$0xff] (!%p324_p2)   ;;  %v1018_v4 = vld [vmem:[%s1250_s2 + $0x8] sm:$0xff] (!%p324_p2)   ;;  %v1020_v6 = vld [vmem:[%s1250_s2 + $0x10] sm:$0xff] (!%p324_p2)   ;;  %vm426_vm1 = vcmask (!%p324_p2), 523264  }
   0x7   : > { %942 = vmatpush3.bf16.msra.mxu0 (!%p324_p2), %v1015_v0  ;;  %949 = vmatprep.mubr.msk.bf16.mxu0 (!%p324_p2), %vm1048_vm0, %v1047_v1  ;;  %v1021_v7 = vld [vmem:[%s1251_s3 + $0x18] sm:$0xff] (!%p324_p2)   ;;  %v1023_v11 = vld [vmem:[%s1253_s5] sm:$0xff] (!%p324_p2)   ;;  %v1025_v13 = vld [vmem:[%s1253_s5 + $0x8] sm:$0xff] (!%p324_p2)  }
   0x8   : > { %954 = vmatpush3.bf16.msra.mxu1 (!%p324_p2), %v1016_v2  ;;  %943 = vmatprep.subr.bf16.mxu0 (!%p324_p2), %v1047_v1  ;;  %v1022_v8 = vld [vmem:[%s1250_s2 + $0x18] sm:$0xff] (!%p324_p2)   ;;  %v1024_v12 = vld [vmem:[%s1254_s6] sm:$0xff] (!%p324_p2)   ;;  %v1026_v14 = vld [vmem:[%s1254_s6 + $0x8] sm:$0xff] (!%p324_p2)  }
   0x9   : > { %955 = vmatprep.subr.bf16.mxu1 (!%p324_p2), %v1047_v1  ;;  %961 = vmatprep.mubr.msk.bf16.mxu1 (!%p324_p2), %vm1048_vm0, %v1047_v1  ;;  %v1027_v15 = vld [vmem:[%s1253_s5 + $0x10] sm:$0xff] (!%p324_p2)   ;;  %v1029_v17 = vld [vmem:[%s1253_s5 + $0x18] sm:$0xff] (!%p324_p2)   ;;  %v1031_v19 = vld [vmem:[%s1253_s5 + $0x20] sm:$0xff] (!%p324_p2)  }
   0xa   : > { %v1028_v16 = vld [vmem:[%s1254_s6 + $0x10] sm:$0xff] (!%p324_p2)   ;;  %v1030_v18 = vld [vmem:[%s1254_s6 + $0x18] sm:$0xff] (!%p324_p2)   ;;  %v1032_v20 = vld [vmem:[%s1254_s6 + $0x20] sm:$0xff] (!%p324_p2)  }
   0xb   : > { %944 = vmatpush3.bf16.msra.mxu0 (!%p324_p2), %v1017_v3  ;;  %v1033_v21 = vld [vmem:[%s1253_s5 + $0x28] sm:$0xff] (!%p324_p2)   ;;  %v1035_v23 = vld [vmem:[%s1253_s5 + $0x30] sm:$0xff] (!%p324_p2)   ;;  %v1037_v25 = vld [vmem:[%s1253_s5 + $0x38] sm:$0xff] (!%p324_p2)  }
   0xc   : > { %956 = vmatpush3.bf16.msra.mxu1 (!%p324_p2), %v1018_v4  ;;  %945 = vmatprep.subr.bf16.mxu0 (!%p324_p2), %v1047_v1  ;;  %v1034_v22 = vld [vmem:[%s1254_s6 + $0x28] sm:$0xff] (!%p324_p2)   ;;  %v1036_v24 = vld [vmem:[%s1254_s6 + $0x30] sm:$0xff] (!%p324_p2)   ;;  %v1038_v26 = vld [vmem:[%s1254_s6 + $0x38] sm:$0xff] (!%p324_p2)  }
   0xd   : > { %s1260_s14 = smov (!%p367_p3, %s871_s14), 9  ;;  %957 = vmatprep.subr.bf16.mxu1 %v1047_v1  ;;  %v890_v29 = vld [vmem:[%s1252_s4] ss:$0 sm:$0xff] }
   0xe   : > { %s876_s25 = sshll.u32 %s1260_s14, 2  ;;  %v891_v40 = vld [vmem:[%s1255_s7] ss:$0 sm:$0xff]  ;;  %s878_s22 = sshll.u32 %s1260_s14, 3 }
   0xf   : > { %s374_s30 = scalar_lea.vmem %s1249_s1, %s876_s25  ;;  %946 = vmatpush3.bf16.msra.mxu0 %v1019_v5  ;;  %s370_s17 = scalar_lea.vmem %s1248_s0, %s876_s25  ;;  %v900_v41 = vld [vmem:[%s1256_s8] ss:$0 sm:$0xff] }
  0x10   : > { %958 = vmatpush3.bf16.msra.mxu1 %v1020_v6  ;;  %947 = vmatprep.subr.bf16.mxu0 %v1047_v1  ;;  %v393_v9 = vld [vmem:[%s374_s30] sm:$0xf]  ;;  %s378_s25 = scalar_lea.vmem %s1257_s9, %s878_s22  ;;  %s382_s28 = scalar_lea.vmem %s1258_s10, %s878_s22 }
  0x11   : > { %959 = vmatprep.subr.bf16.mxu1 %v1047_v1  ;;  %v384_v10 = vld [vmem:[%s370_s17] sm:$0xf] }
  0x13   : > { %948 = vmatpush3.bf16.msra.mxu0 %v1021_v7 }
  0x14   : > { %960 = vmatpush3.bf16.msra.mxu1 %v1022_v8  ;;  %965 = vmatprep.subr.bf16.mxu0 %v1047_v1 }
  0x15   : > { %985 = vmatprep.subr.bf16.mxu1 %v1047_v1 }
  0x16   : > { %950 = vmatmul.mubr.msk.bf16.vlgmr.msra.gmra.mrb[0].mxu0 %vm426_vm1, %v393_v9 }
  0x17   : > { %962 = vmatmul.mubr.msk.bf16.vlgmr.msra.gmra.mrb[0].mxu1 %vm426_vm1, %v384_v10  ;;  %966 = vmatpush3.bf16.msra.mxu0 %v1023_v11 }
  0x18   : > { %986 = vmatpush3.bf16.msra.mxu1 %v1024_v12  ;;  %967 = vmatprep.subr.bf16.mxu0 %v1047_v1 }
  0x19   : > { %987 = vmatprep.subr.bf16.mxu1 %v1047_v1  ;;  %981 = vmatprep.mubr.msk.bf16.mxu0 %vm1048_vm0, %v1047_v1 }
  0x1a   : > { %1001 = vmatprep.mubr.msk.bf16.mxu1 %vm1048_vm0, %v1047_v1 }
  0x1b   : > { %968 = vmatpush3.bf16.msra.mxu0 %v1025_v13 }
  0x1c   : > { %988 = vmatpush3.bf16.msra.mxu1 %v1026_v14  ;;  %969 = vmatprep.subr.bf16.mxu0 %v1047_v1 }
  0x1d   : > { %989 = vmatprep.subr.bf16.mxu1 %v1047_v1 }
  0x1f   : > { %970 = vmatpush3.bf16.msra.mxu0 %v1027_v15 }
  0x20   : > { %990 = vmatpush3.bf16.msra.mxu1 %v1028_v16  ;;  %971 = vmatprep.subr.bf16.mxu0 %v1047_v1 }
  0x21   : > { %991 = vmatprep.subr.bf16.mxu1 %v1047_v1 }
  0x23   : > { %972 = vmatpush3.bf16.msra.mxu0 %v1029_v17 }
  0x24   : > { %992 = vmatpush3.bf16.msra.mxu1 %v1030_v18  ;;  %973 = vmatprep.subr.bf16.mxu0 %v1047_v1 }
  0x25   : > { %993 = vmatprep.subr.bf16.mxu1 %v1047_v1 }
  0x27   : > { %974 = vmatpush3.bf16.msra.mxu0 %v1031_v19 }
  0x28   : > { %994 = vmatpush3.bf16.msra.mxu1 %v1032_v20  ;;  %975 = vmatprep.subr.bf16.mxu0 %v1047_v1 }
  0x29   : > { %995 = vmatprep.subr.bf16.mxu1 %v1047_v1 }
  0x2b   : > { %976 = vmatpush3.bf16.msra.mxu0 %v1033_v21 }
  0x2c   : > { %996 = vmatpush3.bf16.msra.mxu1 %v1034_v22  ;;  %977 = vmatprep.subr.bf16.mxu0 %v1047_v1 }
  0x2d   : > { %997 = vmatprep.subr.bf16.mxu1 %v1047_v1 }
  0x2f   : > { %978 = vmatpush3.bf16.msra.mxu0 %v1035_v23 }
  0x30   : > { %998 = vmatpush3.bf16.msra.mxu1 %v1036_v24  ;;  %979 = vmatprep.subr.bf16.mxu0 %v1047_v1 }
  0x31   : > { %999 = vmatprep.subr.bf16.mxu1 %v1047_v1 }
  0x33   : > { %980 = vmatpush3.bf16.msra.mxu0 %v1037_v25 }
  0x34   : > { %1000 = vmatpush3.bf16.msra.mxu1 %v1038_v26 }
  0xe9   : > { %v464_v27 = vpop.f32.mrb[0].mxu0 }
  0xea   : > { %v531_v28 = vpop.f32.mrb[0].mxu1  ;;  %v951_v30 = vpop.f32.mrb[1].mxu0 }
  0xeb   : > { %v532_v31 = vadd.f32 %v531_v28, %v464_v27  ;;  %v963_v32 = vpop.f32.mrb[1].mxu1  ;;  %v467_v33 = vpop.f32.mrb[2].mxu0 }
  0xec   : > { %v534_v34 = vpop.f32.mrb[2].mxu1  ;;  %v952_v35 = vpop.f32.mrb[3].mxu0 }
  0xed   : > { %v544_v36 = vadd.f32 %v890_v29, %v532_v31  ;;  %v964_v37 = vpop.f32.mrb[3].mxu1 }
  0xef   : > { %v545_v38 = vmax.f32 %v544_v36, 0.0 }
  0xf1   : > { %v546_v39 = vpack.c.bf16 %v545_v38, %v545_v38 }
  0xf3   : > { %982 = vmatmul.mubr.bf16.vlgmr.msra.gmra.mrb[4].mxu0 %v546_v39  ;;  %1002 = vmatmul.mubr.bf16.vlgmr.msra.gmra.mrb[4].mxu1 %v546_v39 }
 0x1c6   : > { %v652_v42 = vpop.f32.mrb[4].mxu0  ;;  %v763_v43 = vpop.f32.mrb[4].mxu1 }
 0x1c7   : > { %v653_v44 = vadd.f32 %v891_v40, %v652_v42  ;;  %v764_v45 = vadd.f32 %v900_v41, %v763_v43  ;;  %v983_v46 = vpop.f32.mrb[5].mxu0  ;;  %v1003_v47 = vpop.f32.mrb[5].mxu1 }
 0x1c8   : > { %v655_v48 = vpop.f32.mrb[6].mxu0  ;;  %v766_v49 = vpop.f32.mrb[6].mxu1 }
 0x1c9   : > { %v909_v50 = vadd.f32 -0.01, %v653_v44  ;;  %v910_v51 = vadd.f32 -0.01, %v764_v45  ;;  %v984_v52 = vpop.f32.mrb[7].mxu0  ;;  %v1004_v53 = vpop.f32.mrb[7].mxu1 }
 0x1cb   : > { %v770_v54 = vmax.f32 %v909_v50, 0.0  ;;  %v773_v55 = vmax.f32 %v910_v51, 0.0 }
 0x1cd   : > { %771 = vst.msk [vmem:[%s378_s25] sm:$0xff] %vm426_vm1, %v770_v54  ;;  %774 = vst.msk [vmem:[%s382_s28] sm:$0xff] %vm426_vm1, %v773_v55 }
 0x1ce PF: > { %s21_s13 = sadd.s32 1, %s1045_s13  }
 0x1cf   : > { %p18_p4 = scmp.ge.s32.totalorder %s21_s13, 12  }
 0x1d1   :  { %20 = sbr.rel (!%p18_p4) target bundleno = 1 (0x1), region = 101 }

// kernel: block_forward.5
= control target key start
LH: loop header
LB: loop body
LE: loop exit
PB: predicated region body
PF: predicated region fallthrough
CT: control target
= control target key end

     0   :  { %s1057_s13 = smov 0   ;;  %s1193_s0 = inlined_call_operand.vmem [shape: f32[128,64], index: 0, kind: input, shape index: {}, may-alias: {0,10}]   ;;  %s1194_s1 = inlined_call_operand.vmem [shape: f32[128,64], index: 1, kind: input, shape index: {}]   ;;  %s1195_s2 = inlined_call_operand.vmem [shape: f32[1,64], index: 2, kind: input, shape index: {}]   ;;  %s1196_s3 = inlined_call_operand.vmem [shape: f32[1,64], index: 3, kind: input, shape index: {}]   ;;  %s1197_s4 = inlined_call_operand.vmem [shape: f32[1,64], index: 4, kind: input, shape index: {}]   ;;  %s1198_s5 = inlined_call_operand.vmem [shape: f32[1,64], index: 5, kind: input, shape index: {}]   ;;  %s1199_s6 = inlined_call_operand.vmem [shape: bf16[64,256], index: 6, kind: input, shape index: {}]   ;;  %s1200_s7 = inlined_call_operand.vmem [shape: f32[1,256], index: 7, kind: input, shape index: {}]   ;;  %s1201_s8 = inlined_call_operand.vmem [shape: bf16[256,64], index: 8, kind: input, shape index: {}]   ;;  %s1202_s9 = inlined_call_operand.vmem [shape: f32[1,64], index: 9, kind: input, shape index: {}]   ;;  %s1203_s10 = inlined_call_operand.vmem [shape: f32[128,64], index: 10, kind: output, shape index: {}, may-alias: {0,10}]  }
   0x1 LB: > { %s875_s14 = sadd.s32 4294967295, %s999_s13   ;;  %p879_p0 = scmp.ge.s32.totalorder %s999_s13, 1  ;;  %s999_s13 = sphi %s1057_s13, %s20_s13  }
   0x2   : > { %p324_p1 = scmp.lt.s32.totalorder %s999_s13, 9 }
   0x4   : > { %p325_p2 = pnand %p879_p0, %p324_p1 }
   0x5   : > { %s880_s15 = sshll.u32 (!%p325_p2), %s875_s14, 1  ;;  %vm392_vm0 = vcmask (!%p325_p2), 523264   ;;  %v886_v21 = vld [vmem:[%s1195_s2] ss:$0 sm:$0xff] (!%p325_p2)  ;;  %v949_v46 = vld [vmem:[%s1199_s6 + $0x4] ss:$8 sps:$4 sm:$0xff] (!%p325_p2)  }
   0x6   : > { %328 = sbr.rel (%p325_p2) target bundleno = 1118 (0x45e), region = 60  ;;  %p368_p3 = scmp.lt.s32.totalorder (!%p325_p2), %s880_s15, 15  ;;  %v887_v23 = vld [vmem:[%s1196_s3] ss:$0 sm:$0xff] (!%p325_p2)  ;;  %546 = vmatprep.subr.bf16.mxu0 (!%p325_p2), %v949_v46  ;;  %v952_v48 = vld [vmem:[%s1199_s6 + $0x14] ss:$8 sps:$4 sm:$0xff] (!%p325_p2)  }
   0x7   : > { %v951_v47 = vld [vmem:[%s1199_s6] ss:$8 sps:$4 sm:$0xff] (!%p325_p2)   ;;  %v954_v49 = vld [vmem:[%s1199_s6 + $0x10] ss:$8 sps:$4 sm:$0xff] (!%p325_p2)   ;;  %v955_v50 = vld [vmem:[%s1199_s6 + $0x24] ss:$8 sps:$4 sm:$0xff] (!%p325_p2)  }
   0x8   : > { %547 = vmatpush1.bf16.msra.mxu0 (!%p325_p2), %v951_v47  ;;  %v957_v51 = vld [vmem:[%s1199_s6 + $0x20] ss:$8 sps:$4 sm:$0xff] (!%p325_p2)   ;;  %v958_v52 = vld [vmem:[%s1199_s6 + $0x34] ss:$8 sps:$4 sm:$0xff] (!%p325_p2)   ;;  %v960_v53 = vld [vmem:[%s1199_s6 + $0x30] ss:$8 sps:$4 sm:$0xff] (!%p325_p2)  }
   0x9   : > { %548 = vmatprep.subr.bf16.mxu0 (!%p325_p2), %v952_v48  ;;  %v1001_v54 = vmov (!%p325_p2), 0   ;;  %v888_v63 = vld [vmem:[%s1197_s4] ss:$0 sm:$0xff] (!%p325_p2) }
   0xa   : > { %578 = vmatprep.mubr.bf16.mxu0 (!%p325_p2), %v1001_v54 }
   0xc   : > { %549 = vmatpush1.bf16.msra.mxu0 (!%p325_p2), %v954_v49 }
   0xd   : > { %s1205_s15 = smov (!%p368_p3, %s880_s15), 15  ;;  %550 = vmatprep.subr.bf16.mxu0 %v955_v50 }
   0xe   : > { %s1065_s16 = sshll.u32 %s1205_s15, 3 }
   0xf   : > { %s377_s19 = scalar_lea.vmem %s1194_s1, %s1065_s16  ;;  %s371_s24 = scalar_lea.vmem %s1193_s0, %s1065_s16 }
  0x10   : > { %v1071_v0 = vld [vmem:[%s377_s19] sm:$0xff]  ;;  %v1073_v1 = vld [vmem:[%s377_s19 + $0x8] sm:$0xff]  ;;  %551 = vmatpush1.bf16.msra.mxu0 %v957_v51  ;;  %s383_s11 = scalar_lea.vmem %s1203_s10, %s1065_s16 }
  0x11   : > { %v393_v2 = vsel %vm392_vm0, %v1071_v0, 0.0  ;;  %v396_v3 = vsel %vm392_vm0, %v1073_v1, 0.0  ;;  %v388_v26 = vld [vmem:[%s371_s24] sm:$0xff]  ;;  %v389_v31 = vld [vmem:[%s371_s24 + $0x8] sm:$0xff]  ;;  %552 = vmatprep.subr.bf16.mxu0 %v958_v52 }
  0x12   : > { %394 = vadd.xlane.f32.xlu0 %v393_v2 }
  0x14   : > { %553 = vmatpush1.bf16.msra.mxu0 %v960_v53 }
  0x16   : > { %397 = vadd.xlane.f32.xlu0 %v396_v3 }
  0x9f   : > { %v395_v4 = vpop.xlane.xlu0 %394 }
  0xa0   : > { %v400_v5 = vmul.f32 0.015625, %v395_v4 }
  0xa2   : > { %v402_v6 = vsub.f32 %v1071_v0, %v400_v5  ;;  %v889_v5 = vld [vmem:[%s1198_s5] ss:$0 sm:$0xff] }
  0xa3   : > { %v398_v7 = vpop.xlane.xlu0 %397 }
  0xa4   : > { %v401_v8 = vmul.f32 0.015625, %v398_v7  ;;  %v404_v9 = vmul.f32 %v402_v6, %v402_v6 }
  0xa6   : > { %v403_v10 = vsub.f32 %v1073_v1, %v401_v8  ;;  %v406_v11 = vsel %vm392_vm0, %v404_v9, 0.0 }
  0xa7   : > { %407 = vadd.xlane.f32.xlu1 %v406_v11  ;;  %v962_v11 = vld [vmem:[%s1201_s8] sm:$0xff]  }
  0xa8   : > { %v405_v12 = vmul.f32 %v403_v10, %v403_v10 }
  0xaa   : > { %v409_v13 = vsel %vm392_vm0, %v405_v12, 0.0  ;;  %v963_v12 = vld [vmem:[%s1201_s8 + $0x48] sm:$0xff]  }
  0xab   : > { %410 = vadd.xlane.f32.xlu1 %v409_v13  ;;  %v964_v13 = vld [vmem:[%s1201_s8 + $0x8] sm:$0xff]  }
 0x134   : > { %v408_v14 = vpop.xlane.xlu1 %407 }
 0x135   : > { %v412_v15 = vmul.f32 0.015625, %v408_v14  ;;  %v965_v14 = vld [vmem:[%s1201_s8 + $0x50] sm:$0xff]  }
 0x137   : > { %v414_v16 = vadd.f32 1e-05, %v412_v15  ;;  %v966_v15 = vld [vmem:[%s1201_s8 + $0x10] sm:$0xff]  }
 0x138   : > { %v411_v17 = vpop.xlane.xlu1 %410 }
 0x139   : > { %977 = vrsqrt.f32 %v414_v16  ;;  %v413_v18 = vmul.f32 0.015625, %v411_v17  ;;  %v967_v16 = vld [vmem:[%s1201_s8 + $0x58] sm:$0xff]  }
 0x13a   : > { %v968_v17 = vld [vmem:[%s1201_s8 + $0x18] sm:$0xff]  }
 0x13b   : > { %v415_v19 = vadd.f32 1e-05, %v413_v18  ;;  %v969_v18 = vld [vmem:[%s1201_s8 + $0x60] sm:$0xff]  }
 0x13d   : > { %979 = vrsqrt.f32 %v415_v19  ;;  %v970_v19 = vld [vmem:[%s1201_s8 + $0x20] sm:$0xff]  }
 0x143   : > { %v978_v20 = vpop.eup %977 }
 0x144   : > { %v418_v22 = vmul.f32 %v978_v20, %v402_v6  ;;  %v971_v20 = vld [vmem:[%s1201_s8 + $0x68] sm:$0xff]  }
 0x146   : > { %v426_v24 = vmul.f32 %v886_v21, %v418_v22  ;;  %v973_v22 = vld [vmem:[%s1201_s8 + $0x70] sm:$0xff]  }
 0x147   : > { %v980_v25 = vpop.eup %979 }
 0x148   : > { %v434_v27 = vadd.f32 %v887_v23, %v426_v24  ;;  %v419_v28 = vmul.f32 %v980_v25, %v403_v10  ;;  %v961_v10 = vld [vmem:[%s1201_s8 + $0x40] sm:$0xff]   ;;  %v975_v24 = vld [vmem:[%s1201_s8 + $0x78] sm:$0xff]  }
 0x149   : > { %918 = vmatprep.subr.bf16.mxu1 %v961_v10  ;;  %v976_v25 = vld [vmem:[%s1201_s8 + $0x38] sm:$0xff]  }
 0x14a   : > { %v436_v29 = vadd.f32 %v434_v27, %v388_v26  ;;  %v427_v30 = vmul.f32 %v886_v21, %v419_v28  ;;  %919 = vmatpush3.bf16.msra.mxu1 %v962_v11  ;;  %v972_v21 = vld [vmem:[%s1201_s8 + $0x28] sm:$0xff]   ;;  %v493_v26 = vlaneseq }
 0x14b   : > { %920 = vmatprep.subr.bf16.mxu1 %v963_v12 }
 0x14c   : > { %v440_v32 = vsel %vm392_vm0, %v436_v29, 0.0  ;;  %v435_v33 = vadd.f32 %v887_v23, %v427_v30  ;;  %v974_v23 = vld [vmem:[%s1201_s8 + $0x30] sm:$0xff]   ;;  %v494_v27 = vshrl.u32 %v493_v26, 7 }
 0x14d   : > { %441 = vadd.xlane.f32.xlu0 %v440_v32 }
 0x14e   : > { %v437_v34 = vadd.f32 %v435_v33, %v389_v31  ;;  %921 = vmatpush3.bf16.msra.mxu1 %v964_v13  ;;  %v495_v28 = vsub.s32 0, %v494_v27  ;;  %v499_v30 = vsub.s32 1, %v494_v27 }
 0x14f   : > { %922 = vmatprep.subr.bf16.mxu1 %v965_v14 }
 0x150   : > { %v443_v35 = vsel %vm392_vm0, %v437_v34, 0.0 }
 0x151   : > { %444 = vadd.xlane.f32.xlu1 %v443_v35 }
 0x152   : > { %923 = vmatpush3.bf16.msra.mxu1 %v966_v15 }
 0x153   : > { %924 = vmatprep.subr.bf16.mxu1 %v967_v16 }
 0x156   : > { %925 = vmatpush3.bf16.msra.mxu1 %v968_v17 }
 0x157   : > { %926 = vmatprep.subr.bf16.mxu1 %v969_v18  ;;  %v899_v18 = vld [vmem:[%s1202_s9] ss:$0 sm:$0xff] }
 0x15a   : > { %927 = vmatpush3.bf16.msra.mxu1 %v970_v19 }
 0x15b   : > { %928 = vmatprep.subr.bf16.mxu1 %v971_v20 }
 0x15e   : > { %929 = vmatpush3.bf16.msra.mxu1 %v972_v21 }
 0x15f   : > { %930 = vmatprep.subr.bf16.mxu1 %v973_v22 }
 0x162   : > { %931 = vmatpush3.bf16.msra.mxu1 %v974_v23 }
 0x163   : > { %932 = vmatprep.subr.bf16.mxu1 %v975_v24 }
 0x166   : > { %933 = vmatpush3.bf16.msra.mxu1 %v976_v25 }
 0x1da   : > { %v442_v36 = vpop.xlane.xlu0 %441 }
 0x1db   : > { %v446_v37 = vmul.f32 0.015625, %v442_v36 }
 0x1dd   : > { %v448_v38 = vsub.f32 %v436_v29, %v446_v37  ;;  %v491_v29 = vld [vmem:[%s1200_s7] sm:$0x3] }
 0x1de   : > { %v445_v39 = vpop.xlane.xlu1 %444  ;;  %v496_v31 = vrot.slane %v491_v29, %v495_v28  ;;  %v500_v32 = vrot.slane %v491_v29, %v499_v30 }
 0x1df   : > { %v447_v40 = vmul.f32 0.015625, %v445_v39  ;;  %v450_v41 = vmul.f32 %v448_v38, %v448_v38 }
 0x1e1   : > { %v449_v42 = vsub.f32 %v437_v34, %v447_v40  ;;  %v452_v43 = vsel %vm392_vm0, %v450_v41, 0.0 }
 0x1e2   : > { %453 = vadd.xlane.f32.xlu0 %v452_v43 }
 0x1e3   : > { %v451_v44 = vmul.f32 %v449_v42, %v449_v42 }
 0x1e5   : > { %v455_v45 = vsel %vm392_vm0, %v451_v44, 0.0 }
 0x1e6   : > { %456 = vadd.xlane.f32.xlu1 %v455_v45 }
 0x26f   : > { %v454_v55 = vpop.xlane.xlu0 %453 }
 0x270   : > { %v458_v56 = vmul.f32 0.015625, %v454_v55 }
 0x272   : > { %v460_v57 = vadd.f32 1e-05, %v458_v56 }
 0x273   : > { %v457_v58 = vpop.xlane.xlu1 %456 }
 0x274   : > { %981 = vrsqrt.f32 %v460_v57  ;;  %v459_v59 = vmul.f32 0.015625, %v457_v58 }
 0x276   : > { %v461_v60 = vadd.f32 1e-05, %v459_v59 }
 0x278   : > { %983 = vrsqrt.f32 %v461_v60 }
 0x27e   : > { %v982_v61 = vpop.eup %981 }
 0x27f   : > { %v464_v62 = vmul.f32 %v982_v61, %v448_v38 }
 0x281   : > { %v472_v4 = vmul.f32 %v888_v63, %v464_v62 }
 0x282   : > { %v984_v2 = vpop.eup %983 }
 0x283   : > { %v465_v3 = vmul.f32 %v984_v2, %v449_v42  ;;  %v480_v7 = vadd.f32 %v889_v5, %v472_v4 }
 0x285   : > { %v473_v6 = vmul.f32 %v888_v63, %v465_v3 }
 0x287   : > { %v481_v8 = vadd.f32 %v889_v5, %v473_v6 }
 0x289   : > { %v482_v9 = vpack.c.bf16 %v481_v8, %v480_v7 }
 0x28b   : > { %898 = vmatmul.mubr.msk.bf16.vlgmr.msra.gmra.mrb[0].mxu0 %vm392_vm0, %v482_v9 }
 0x35e   : > { %v580_v33 = vpop.f32.mrb[0].mxu0 }
 0x35f   : > { %v581_v34 = vadd.f32 %v580_v33, %v496_v31  ;;  %v582_v35 = vpop.f32.mrb[1].mxu0 }
 0x360   : > { %v583_v36 = vadd.f32 %v582_v35, %v500_v32  ;;  %v584_v37 = vpop.f32.mrb[2].mxu0 }
 0x361   : > { %v593_v38 = vmul.f32 0.044715, %v581_v34  ;;  %v585_v39 = vadd.f32 %v584_v37, %v496_v31  ;;  %v586_v40 = vpop.f32.mrb[3].mxu0  ;;  %v589_v5 = vmul.f32 0.5, %v581_v34 }
 0x362   : > { %v594_v41 = vmul.f32 0.044715, %v583_v36  ;;  %v587_v42 = vadd.f32 %v586_v40, %v500_v32  ;;  %v590_v8 = vmul.f32 0.5, %v583_v36 }
 0x363   : > { %v597_v43 = vmul.f32 %v593_v38, %v581_v34  ;;  %v595_v44 = vmul.f32 0.044715, %v585_v39  ;;  %v591_v6 = vmul.f32 0.5, %v585_v39 }
 0x364   : > { %v596_v45 = vmul.f32 0.044715, %v587_v42  ;;  %v598_v46 = vmul.f32 %v594_v41, %v583_v36  ;;  %v592_v9 = vmul.f32 0.5, %v587_v42 }
 0x365   : > { %v601_v47 = vmul.f32 %v597_v43, %v581_v34  ;;  %v599_v48 = vmul.f32 %v595_v44, %v585_v39 }
 0x366   : > { %v600_v49 = vmul.f32 %v596_v45, %v587_v42  ;;  %v602_v50 = vmul.f32 %v598_v46, %v583_v36 }
 0x367   : > { %v603_v51 = vmul.f32 %v599_v48, %v585_v39  ;;  %v605_v52 = vadd.f32 %v601_v47, %v581_v34 }
 0x368   : > { %v604_v53 = vmul.f32 %v600_v49, %v587_v42  ;;  %v606_v54 = vadd.f32 %v602_v50, %v583_v36 }
 0x369   : > { %v607_v55 = vadd.f32 %v603_v51, %v585_v39  ;;  %v609_v56 = vmul.f32 0.7978846, %v605_v52 }
 0x36a   : > { %v608_v57 = vadd.f32 %v604_v53, %v587_v42  ;;  %v610_v58 = vmul.f32 0.7978846, %v606_v54 }
 0x36b   : > { %v611_v59 = vmul.f32 0.7978846, %v607_v55  ;;  %985 = vtanh.f32 %v609_v56 }
 0x36c   : > { %v612_v60 = vmul.f32 0.7978846, %v608_v57  ;;  %987 = vtanh.f32 %v610_v58 }
 0x36d   : > { %989 = vtanh.f32 %v611_v59 }
 0x36e   : > { %991 = vtanh.f32 %v612_v60 }
 0x375   : > { %v986_v61 = vpop.eup %985 }
 0x376   : > { %v988_v62 = vpop.eup %987  ;;  %v617_v63 = vadd.f32 1.0, %v986_v61 }
 0x377   : > { %v990_v2 = vpop.eup %989  ;;  %v618_v3 = vadd.f32 1.0, %v988_v62 }
 0x378   : > { %v992_v4 = vpop.eup %991  ;;  %v619_v7 = vadd.f32 1.0, %v990_v2  ;;  %v621_v11 = vmul.f32 %v617_v63, %v589_v5 }
 0x379   : > { %v620_v10 = vadd.f32 1.0, %v992_v4  ;;  %v622_v13 = vmul.f32 %v618_v3, %v590_v8 }
 0x37a   : > { %v623_v12 = vmul.f32 %v619_v7, %v591_v6 }
 0x37b   : > { %v624_v14 = vmul.f32 %v620_v10, %v592_v9 }
 0x37c   : > { %v625_v15 = vpack.c.bf16 %v623_v12, %v621_v11 }
 0x37d   : > { %v626_v16 = vpack.c.bf16 %v624_v14, %v622_v13 }
 0x37f   : > { %794 = vmatprep.mubr.bf16.mxu1 %v626_v16 }
 0x380   : > { %795 = vmatmul.mubr.bf16.vlgmr.msra.gmra.mrb[0].mxu1 %v625_v15 }
 0x453   : > { %v934_v17 = vpop.f32.mrb[0].mxu1 }
 0x454   : > { %v935_v19 = vpop.f32.mrb[1].mxu1 }
 0x455   : > { %v936_v20 = vadd.f32 %v935_v19, %v934_v17  ;;  %v937_v21 = vpop.f32.mrb[2].mxu1 }
 0x456   : > { %v938_v22 = vpop.f32.mrb[3].mxu1 }
 0x457   : > { %v797_v23 = vadd.f32 %v936_v20, %v899_v18  ;;  %v939_v24 = vadd.f32 %v938_v22, %v937_v21 }
 0x459   : > { %v803_v25 = vadd.f32 %v797_v23, %v1071_v0  ;;  %v800_v26 = vadd.f32 %v939_v24, %v899_v18 }
 0x45b   : > { %805 = vst.msk [vmem:[%s383_s11] sm:$0xff] %vm392_vm0, %v803_v25  ;;  %v804_v27 = vadd.f32 %v800_v26, %v1073_v1 }
 0x45d   : > { %806 = vst.msk [vmem:[%s383_s11 + $0x8] sm:$0xff] %vm392_vm0, %v804_v27 }
 0x45e PF: > { %s20_s13 = sadd.s32 1, %s999_s13  }
 0x45f   : > { %p17_p4 = scmp.ge.s32.totalorder %s20_s13, 10  }
 0x461   :  { %19 = sbr.rel (!%p17_p4) target bundleno = 1 (0x1), region = 93 }

</bundles_post_ra>
